<compile_context>
chip_gen: v6e
topology: v6e:2x2x1
jax: 0.10.0
libtpu: 0.0.40
codegen_flags: <defaults>
</compile_context>

<pallas_src>
import math

import jax
import jax.numpy as jnp
from jax.experimental import pallas as pl
from jax.experimental.pallas import tpu as pltpu

LANE = 128
SUBLANE_BF16 = 16          # bf16 packs 16 rows per vreg
HIDDEN = 64                # fixed hidden size of TransitionSimple's 'mlp' path
MAX_BATCH_TILE = 256       # rows per grid step (fills MXU, tiny VMEM footprint)


def _round_up(n, m):
    return ((n + m - 1) // m) * m


def _choose_batch_tile(batch):
    return min(MAX_BATCH_TILE, _round_up(batch, SUBLANE_BF16))


# ----------------------------------------------------------------------------
# Kernels (one pallas_call per forward; weights resident across grid steps)
# ----------------------------------------------------------------------------
def _transition_mlp_kernel(x_ref, w1_ref, b1_ref, w2_ref, b2_ref,
                           w3_ref, b3_ref, o_ref):
    """Fused 3-layer MLP: relu(relu(x@W1+b1)@W2+b2)@W3+b3.

    x is the pre-packed, lane-padded cat(z, a); every feature dim is already
    zero-padded to 128 lanes, so all matmuls are lane-dense single pushes.
    """
    h = jnp.dot(x_ref[...], w1_ref[...], preferred_element_type=jnp.float32)
    h = jnp.maximum(h + b1_ref[...], 0.0)

    h = jnp.dot(h.astype(w2_ref.dtype), w2_ref[...],
                preferred_element_type=jnp.float32)
    h = jnp.maximum(h + b2_ref[...], 0.0)

    o = jnp.dot(h.astype(w3_ref.dtype), w3_ref[...],
                preferred_element_type=jnp.float32)
    o_ref[...] = (o + b3_ref[...]).astype(o_ref.dtype)


def _transition_linear_kernel(x_ref, w_ref, o_ref):
    """trans_type='linear': cat(z, a) @ W (bias-free), single MXU push."""
    o_ref[...] = jnp.dot(x_ref[...], w_ref[...],
                         preferred_element_type=jnp.float32
                         ).astype(o_ref.dtype)


# ----------------------------------------------------------------------------
# Wrappers
# ----------------------------------------------------------------------------
def _pack_inputs(z, a, in_pad, b_pad, dtype):
    """One-time pack: cat(z, a), zero-pad lanes to in_pad and rows to b_pad."""
    x = jnp.concatenate([z, a], axis=-1)
    batch, in_dim = x.shape
    x = jnp.pad(x, ((0, b_pad - batch), (0, in_pad - in_dim)))
    return x.astype(dtype)


@jax.jit
def transition_mlp_forward(z, a, padded):
    """Single fused pallas_call for the 'mlp' transition.

    Returns the lane-dense padded [B, 128] output slab; slice [:, :z_dim]
    downstream only if the narrow view is required.
    """
    w1, b1, w2, b2, w3, b3 = padded
    batch = z.shape[0]
    in_pad, hid_pad = w1.shape
    out_pad = w3.shape[1]

    tile_b = _choose_batch_tile(batch)
    b_pad = _round_up(batch, tile_b)
    grid_b = b_pad // tile_b

    x = _pack_inputs(z, a, in_pad, b_pad, w1.dtype)

    const = lambda i: (0, 0)          # weights/biases: resident across grid steps
    flops = 2 * b_pad * (in_pad * hid_pad + hid_pad * hid_pad + hid_pad * out_pad)
    bytes_accessed = (x.size * x.dtype.itemsize
                      + sum(t.size * t.dtype.itemsize for t in padded)
                      + b_pad * out_pad * 4)

    out = pl.pallas_call(
        _transition_mlp_kernel,
        out_shape=jax.ShapeDtypeStruct((b_pad, out_pad), jnp.float32),
        grid=(grid_b,),
        in_specs=[
            pl.BlockSpec((tile_b, in_pad), lambda i: (i, 0)),   # activations stream
            pl.BlockSpec((in_pad, hid_pad), const),
            pl.BlockSpec((1, hid_pad), const),
            pl.BlockSpec((hid_pad, hid_pad), const),
            pl.BlockSpec((1, hid_pad), const),
            pl.BlockSpec((hid_pad, out_pad), const),
            pl.BlockSpec((1, out_pad), const),
        ],
        out_specs=pl.BlockSpec((tile_b, out_pad), lambda i: (i, 0)),
        compiler_params=pltpu.CompilerParams(
            dimension_semantics=("parallel",)),
        cost_estimate=pl.CostEstimate(flops=flops, transcendentals=0,
                                      bytes_accessed=bytes_accessed),
    )(x, w1, b1, w2, b2, w3, b3)
    return out[:batch]


@jax.jit
def transition_linear_forward(z, a, padded):
    """Single pallas_call for the 'linear' transition (padded output slab)."""
    (w,) = padded
    batch = z.shape[0]
    in_pad, out_pad = w.shape

    tile_b = _choose_batch_tile(batch)
    b_pad = _round_up(batch, tile_b)
    grid_b = b_pad // tile_b

    x = _pack_inputs(z, a, in_pad, b_pad, w.dtype)

    flops = 2 * b_pad * in_pad * out_pad
    bytes_accessed = (x.size * x.dtype.itemsize
                      + w.size * w.dtype.itemsize
                      + b_pad * out_pad * 4)

    out = pl.pallas_call(
        _transition_linear_kernel,
        out_shape=jax.ShapeDtypeStruct((b_pad, out_pad), jnp.float32),
        grid=(grid_b,),
        in_specs=[
            pl.BlockSpec((tile_b, in_pad), lambda i: (i, 0)),
            pl.BlockSpec((in_pad, out_pad), lambda i: (0, 0)),
        ],
        out_specs=pl.BlockSpec((tile_b, out_pad), lambda i: (i, 0)),
        compiler_params=pltpu.CompilerParams(
            dimension_semantics=("parallel",)),
        cost_estimate=pl.CostEstimate(flops=flops, transcendentals=0,
                                      bytes_accessed=bytes_accessed),
    )(x, w)
    return out[:batch]


def transition_forward(z, a, params):
    if params["trans_type"] == "mlp":
        return transition_mlp_forward(z, a, params["padded"])
    elif params["trans_type"] == "linear":
        return transition_linear_forward(z, a, params["padded"])
    raise ValueError(params["trans_type"])
# TODO(synk): reparam_w / reparam_w_ortho_gs / reparam_w_ortho_cont modes
# (Gram-Schmidt orthogonalization + batched determinants) are not ported.


# ----------------------------------------------------------------------------
# Parameter init (mirrors torch.nn.Linear default init; weights stored [in, out])
# ----------------------------------------------------------------------------
def init_transition_params(key, z_dim, action_dim, trans_type="mlp",
                           param_dtype=jnp.bfloat16):
    in_dim = z_dim + action_dim
    in_pad = _round_up(in_dim, LANE)
    out_pad = _round_up(z_dim, LANE)

    if trans_type == "linear":
        bound = 1.0 / math.sqrt(in_dim)
        key, wk = jax.random.split(key)
        w = jax.random.uniform(wk, (in_dim, z_dim), jnp.float32, -bound, bound)
        w_pad = jnp.zeros((in_pad, out_pad), jnp.float32).at[:in_dim, :z_dim].set(w)
        padded = (w_pad.astype(param_dtype),)
        return {"trans_type": trans_type, "raw": (w,), "padded": padded}

    elif trans_type == "mlp":
        hid_pad = _round_up(HIDDEN, LANE)
        sizes = [in_dim, HIDDEN, HIDDEN, z_dim]
        raw = []
        for i in range(3):
            fan_in, fan_out = sizes[i], sizes[i + 1]
            key, wk, bk = jax.random.split(key, 3)
            bound = 1.0 / math.sqrt(fan_in)
            w = jax.random.uniform(wk, (fan_in, fan_out), jnp.float32, -bound, bound)
            b = jax.random.uniform(bk, (fan_out,), jnp.float32, -bound, bound)
            raw.append((w, b))
        (w1, b1), (w2, b2), (w3, b3) = raw

        # Zero-pad every feature dim to a multiple of 128 lanes (done once,
        # off the hot path).  Zeros are exact: padded rows multiply zero input
        # lanes, and padded columns stay 0 through bias-add and ReLU so they
        # contribute nothing to later matmuls.  W1 is stored stacked
        # ([z rows; a rows; zero rows]) so cat(z, a) needs ONE matmul.
        w1p = jnp.zeros((in_pad, hid_pad), jnp.float32).at[:in_dim, :HIDDEN].set(w1)
        b1p = jnp.zeros((1, hid_pad), jnp.float32).at[0, :HIDDEN].set(b1)
        w2p = jnp.zeros((hid_pad, hid_pad), jnp.float32).at[:HIDDEN, :HIDDEN].set(w2)
        b2p = jnp.zeros((1, hid_pad), jnp.float32).at[0, :HIDDEN].set(b2)
        w3p = jnp.zeros((hid_pad, out_pad), jnp.float32).at[:HIDDEN, :z_dim].set(w3)
        b3p = jnp.zeros((1, out_pad), jnp.float32).at[0, :z_dim].set(b3)

        padded = (w1p.astype(param_dtype), b1p,
                  w2p.astype(param_dtype), b2p,
                  w3p.astype(param_dtype), b3p)
        return {"trans_type": trans_type, "raw": tuple(raw), "padded": padded}

    raise ValueError(trans_type)


# ----------------------------------------------------------------------------
# Pure-JAX reference (mirrors the PyTorch module, f32)
# ----------------------------------------------------------------------------
def transition_reference(z, a, params):
    x = jnp.concatenate([z, a], axis=-1)
    if params["trans_type"] == "linear":
        (w,) = params["raw"]
        return x @ w
    (w1, b1), (w2, b2), (w3, b3) = params["raw"]
    h = jnp.maximum(x @ w1 + b1, 0.0)
    h = jnp.maximum(h @ w2 + b2, 0.0)
    return h @ w3 + b3


def _check(out_padded, ref, tol=0.05):
    out = out_padded[:, :ref.shape[1]]
    err = jnp.max(jnp.abs(out - ref))
    scale = jnp.max(jnp.abs(ref)) + 1e-6
    assert float(err / scale) < tol, f"max rel-to-max error {float(err / scale)}"


if __name__ == "__main__":
    key = jax.random.PRNGKey(0)
    z_dim = 16
    action_dim = 8

    # --- trans_type = 'mlp': batch large enough to exercise the batch grid
    #     (512 rows -> tile 256, grid of 2, weights resident across steps) ---
    batch = 512
    kz, ka, kp, kz2, ka2 = jax.random.split(key, 5)
    z = jax.random.normal(kz, (batch, z_dim), jnp.float32)
    a = jax.random.normal(ka, (batch, action_dim), jnp.float32)

    params_mlp = init_transition_params(kp, z_dim, action_dim, trans_type="mlp")
    out_mlp = jax.block_until_ready(transition_forward(z, a, params_mlp))
    assert out_mlp.shape == (batch, LANE)          # lane-dense padded slab
    _check(out_mlp, transition_reference(z, a, params_mlp))

    # --- trans_type = 'linear': ragged small batch (padded to 16-row tile) ---
    batch2 = 40
    z2 = jax.random.normal(kz2, (batch2, z_dim), jnp.float32)
    a2 = jax.random.normal(ka2, (batch2, action_dim), jnp.float32)

    params_lin = init_transition_params(kp, z_dim, action_dim, trans_type="linear")
    out_lin = jax.block_until_ready(transition_forward(z2, a2, params_lin))
    assert out_lin.shape == (batch2, LANE)
    _check(out_lin, transition_reference(z2, a2, params_lin))

    print("KERNEL_OK")
</pallas_src>

<mosaic_0001>
module attributes {stable_mosaic.version = 11 : i64} {
  func.func @_transition_mlp_kernel(%arg0: i32, %arg1: memref<256x128xbf16, #tpu.memory_space<vmem>>, %arg2: memref<128x128xbf16, #tpu.memory_space<vmem>>, %arg3: memref<1x128xf32, #tpu.memory_space<vmem>>, %arg4: memref<128x128xbf16, #tpu.memory_space<vmem>>, %arg5: memref<1x128xf32, #tpu.memory_space<vmem>>, %arg6: memref<128x128xbf16, #tpu.memory_space<vmem>>, %arg7: memref<1x128xf32, #tpu.memory_space<vmem>>, %arg8: memref<256x128xf32, #tpu.memory_space<vmem>>) attributes {dimension_semantics = [#tpu.dimension_semantics<parallel>], iteration_bounds = array<i64: 2>, scalar_prefetch = 0 : i64, scratch_operands = 0 : i64, tpu.core_type = #tpu.core_type<tc>, window_params = [{transform_indices = @transform_0, window_bounds = array<i64: 256, 128>}, {pipeline_mode = #tpu.pipeline_mode<synchronous>, transform_indices = @transform_1, window_bounds = array<i64: 128, 128>}, {pipeline_mode = #tpu.pipeline_mode<synchronous>, transform_indices = @transform_2, window_bounds = array<i64: 1, 128>}, {pipeline_mode = #tpu.pipeline_mode<synchronous>, transform_indices = @transform_3, window_bounds = array<i64: 128, 128>}, {pipeline_mode = #tpu.pipeline_mode<synchronous>, transform_indices = @transform_4, window_bounds = array<i64: 1, 128>}, {pipeline_mode = #tpu.pipeline_mode<synchronous>, transform_indices = @transform_5, window_bounds = array<i64: 128, 128>}, {pipeline_mode = #tpu.pipeline_mode<synchronous>, transform_indices = @transform_6, window_bounds = array<i64: 1, 128>}, {transform_indices = @transform_7, window_bounds = array<i64: 256, 128>}]} {
    %c0 = arith.constant 0 : index
    %c0_0 = arith.constant 0 : index
    %0 = vector.load %arg1[%c0, %c0_0] : memref<256x128xbf16, #tpu.memory_space<vmem>>, vector<256x128xbf16>
    %c0_1 = arith.constant 0 : index
    %c0_2 = arith.constant 0 : index
    %1 = vector.load %arg2[%c0_1, %c0_2] : memref<128x128xbf16, #tpu.memory_space<vmem>>, vector<128x128xbf16>
    %cst = arith.constant dense<0.000000e+00> : vector<256x128xf32>
    %2 = tpu.matmul %0, %1, %cst {dimension_numbers = #tpu.dot_dimension_numbers<[1], [0], [0], [1], [0, 0, 1, 1], [], []>} : vector<256x128xbf16>, vector<128x128xbf16>, vector<256x128xf32> -> vector<256x128xf32>
    %c0_3 = arith.constant 0 : index
    %c0_4 = arith.constant 0 : index
    %3 = vector.load %arg3[%c0_3, %c0_4] : memref<1x128xf32, #tpu.memory_space<vmem>>, vector<1x128xf32>
    %4 = vector.broadcast %3 : vector<1x128xf32> to vector<256x128xf32>
    %5 = arith.addf %2, %4 : vector<256x128xf32>
    %cst_5 = arith.constant 0.000000e+00 : f32
    %6 = vector.broadcast %cst_5 : f32 to vector<256x128xf32>
    %7 = arith.maximumf %5, %6 : vector<256x128xf32>
    %8 = arith.truncf %7 : vector<256x128xf32> to vector<256x128xbf16>
    %c0_6 = arith.constant 0 : index
    %c0_7 = arith.constant 0 : index
    %9 = vector.load %arg4[%c0_6, %c0_7] : memref<128x128xbf16, #tpu.memory_space<vmem>>, vector<128x128xbf16>
    %cst_8 = arith.constant dense<0.000000e+00> : vector<256x128xf32>
    %10 = tpu.matmul %8, %9, %cst_8 {dimension_numbers = #tpu.dot_dimension_numbers<[1], [0], [0], [1], [0, 0, 1, 1], [], []>} : vector<256x128xbf16>, vector<128x128xbf16>, vector<256x128xf32> -> vector<256x128xf32>
    %c0_9 = arith.constant 0 : index
    %c0_10 = arith.constant 0 : index
    %11 = vector.load %arg5[%c0_9, %c0_10] : memref<1x128xf32, #tpu.memory_space<vmem>>, vector<1x128xf32>
    %12 = vector.broadcast %11 : vector<1x128xf32> to vector<256x128xf32>
    %13 = arith.addf %10, %12 : vector<256x128xf32>
    %cst_11 = arith.constant 0.000000e+00 : f32
    %14 = vector.broadcast %cst_11 : f32 to vector<256x128xf32>
    %15 = arith.maximumf %13, %14 : vector<256x128xf32>
    %16 = arith.truncf %15 : vector<256x128xf32> to vector<256x128xbf16>
    %c0_12 = arith.constant 0 : index
    %c0_13 = arith.constant 0 : index
    %17 = vector.load %arg6[%c0_12, %c0_13] : memref<128x128xbf16, #tpu.memory_space<vmem>>, vector<128x128xbf16>
    %cst_14 = arith.constant dense<0.000000e+00> : vector<256x128xf32>
    %18 = tpu.matmul %16, %17, %cst_14 {dimension_numbers = #tpu.dot_dimension_numbers<[1], [0], [0], [1], [0, 0, 1, 1], [], []>} : vector<256x128xbf16>, vector<128x128xbf16>, vector<256x128xf32> -> vector<256x128xf32>
    %c0_15 = arith.constant 0 : index
    %c0_16 = arith.constant 0 : index
    %19 = vector.load %arg7[%c0_15, %c0_16] : memref<1x128xf32, #tpu.memory_space<vmem>>, vector<1x128xf32>
    %20 = vector.broadcast %19 : vector<1x128xf32> to vector<256x128xf32>
    %21 = arith.addf %18, %20 : vector<256x128xf32>
    %c0_17 = arith.constant 0 : index
    %c0_18 = arith.constant 0 : index
    %22 = vector.load %arg8[%c0_17, %c0_18] : memref<256x128xf32, #tpu.memory_space<vmem>>, vector<256x128xf32>
    tpu.vector_store %arg8[%c0_17, %c0_18], %21 {strides = array<i32>} : memref<256x128xf32, #tpu.memory_space<vmem>>, vector<256x128xf32>,
    return
  }
  func.func @transform_0(%arg0: i32) -> (i32, i32) {
    %c0_i32 = arith.constant 0 : i32
    %c0_i32_0 = arith.constant 0 : i32
    return %arg0, %c0_i32 : i32, i32
  }
  func.func @transform_1(%arg0: i32) -> (i32, i32) {
    %c0_i32 = arith.constant 0 : i32
    %c0_i32_0 = arith.constant 0 : i32
    %c0_i32_1 = arith.constant 0 : i32
    return %c0_i32, %c0_i32_0 : i32, i32
  }
  func.func @transform_2(%arg0: i32) -> (i32, i32) {
    %c0_i32 = arith.constant 0 : i32
    %c0_i32_0 = arith.constant 0 : i32
    %c0_i32_1 = arith.constant 0 : i32
    return %c0_i32, %c0_i32_0 : i32, i32
  }
  func.func @transform_3(%arg0: i32) -> (i32, i32) {
    %c0_i32 = arith.constant 0 : i32
    %c0_i32_0 = arith.constant 0 : i32
    %c0_i32_1 = arith.constant 0 : i32
    return %c0_i32, %c0_i32_0 : i32, i32
  }
  func.func @transform_4(%arg0: i32) -> (i32, i32) {
    %c0_i32 = arith.constant 0 : i32
    %c0_i32_0 = arith.constant 0 : i32
    %c0_i32_1 = arith.constant 0 : i32
    return %c0_i32, %c0_i32_0 : i32, i32
  }
  func.func @transform_5(%arg0: i32) -> (i32, i32) {
    %c0_i32 = arith.constant 0 : i32
    %c0_i32_0 = arith.constant 0 : i32
    %c0_i32_1 = arith.constant 0 : i32
    return %c0_i32, %c0_i32_0 : i32, i32
  }
  func.func @transform_6(%arg0: i32) -> (i32, i32) {
    %c0_i32 = arith.constant 0 : i32
    %c0_i32_0 = arith.constant 0 : i32
    %c0_i32_1 = arith.constant 0 : i32
    return %c0_i32, %c0_i32_0 : i32, i32
  }
  func.func @transform_7(%arg0: i32) -> (i32, i32) {
    %c0_i32 = arith.constant 0 : i32
    %c0_i32_0 = arith.constant 0 : i32
    return %arg0, %c0_i32 : i32, i32
  }
}

</mosaic_0001>

<bundles_post_ra>
// kernel: transition_mlp_forward.1
= control target key start
LH: loop header
LB: loop body
LE: loop exit
PB: predicated region body
PF: predicated region fallthrough
CT: control target
= control target key end

     0   :  { %12 = vsyncpa [#allocation3], 0  ;;  %s2139_s0 = inlined_call_operand.vmem [shape: bf16[512,128], index: 0, kind: input, shape index: {}]   ;;  %s2140_s1 = inlined_call_operand.vmem [shape: bf16[128,128], index: 1, kind: input, shape index: {}]   ;;  %s2141_s2 = inlined_call_operand.vmem [shape: f32[1,128], index: 2, kind: input, shape index: {}]   ;;  %s2142_s3 = inlined_call_operand.vmem [shape: bf16[128,128], index: 3, kind: input, shape index: {}]   ;;  %s2143_s4 = inlined_call_operand.vmem [shape: f32[1,128], index: 4, kind: input, shape index: {}]   ;;  %s2144_s5 = inlined_call_operand.vmem [shape: bf16[128,128], index: 5, kind: input, shape index: {}]   ;;  %s2145_s6 = inlined_call_operand.vmem [shape: f32[1,128], index: 6, kind: input, shape index: {}]   ;;  %s2146_s7 = inlined_call_operand.hbm [shape: f32[512,128], index: 7, kind: output, shape index: {}]  }
   0x1   :  { %14 = vsyncpa [#allocation3 + $0x1], 0  ;;  %s1783_s24 = smov 0   ;;  %s1785_s25 = smov 0  }
   0x2   :  { %s1787_s26 = smov 0   ;;  %s1789_s27 = smov 0  }
   0x3 LB: > { %s1804_s28 = sadd.s32 4294967295, %s1738_s27   ;;  %s1309_s29 = sadd.s32 4294967294, %s1738_s27   ;;  %s1738_s27 = sphi %s1789_s27, %s2152_s27   ;;  %s1734_s26 = sphi %s1787_s26, %s2151_s26   ;;  %s1730_s25 = sphi %s1785_s25, %s2150_s25   ;;  %s1726_s24 = sphi %s1783_s24, %s2149_s24  }
   0x4   : > { %s1808_s30 = sadd.s32 1, %s1738_s27   ;;  %s179_s8 = sadd.s32 1, %s1734_s26 }
   0x5   : > { %s176_s9 = ssub.s32 %s1738_s27, %s1808_s30  ;;  %p189_p0 = scmp.ne.s32.totalorder %s1734_s26, %s1730_s25 }
   0x6   : > { %p177_p1 = scmp.eq.s32.totalorder %s176_s9, 0  ;;  %p190_p2 = scmp.eq.s32.totalorder %s1804_s28, 1 }
   0x7   : > { %p195_p3 = scmp.ne.s32.totalorder %s1730_s25, %s1726_s24  ;;  %p196_p4 = scmp.eq.s32.totalorder %s1309_s29, 1 }
   0x8   : > { %s1819_s10 = scalar_select %p177_p1, %s1734_s26, %s179_s8  }
   0x9   : > { %p1821_p5 = por %p190_p2, %p189_p0  ;;  %p1825_p6 = por %p196_p4, %p195_p3 }
   0xa   : > { %p1312_p7 = scmp.ge.s32.totalorder %s1738_s27, 1  ;;  %p241_p8 = scmp.lt.s32.totalorder %s1738_s27, 3 }
   0xc   : > { %p242_p9 = pnand %p1312_p7, %p241_p8 }
   0xd   : > { %s1314_s15 = sshll.u32 (!%p242_p9), %s1804_s28, 5  ;;  %s1740_s9 = smov (!%p242_p9), [#allocation2]  }
   0xe   : > { %245 = sbr.rel (%p242_p9) target bundleno = 735 (0x2df), region = 48  ;;  %p274_p10 = scmp.lt.s32.totalorder (!%p242_p9), %s1314_s15, 63 }
   0xf   : > { %s1682_s13 = sshll.u32 (!%p242_p9), %s1740_s9, 4  ;;  %s1683_s13 = int_to_ptr.vmem [resolvable:$false] %s1682_s13 }
  0x10   : > { %s1684_s14 = scalar_lea.vmem (!%p242_p9), %s1683_s13, 8192 }
  0x13   : > { %v1638_v0 = vld [vmem:[%s2140_s1 + $0x38] sm:$0xff]   ;;  %v1639_v1 = vld [vmem:[%s2140_s1 + $0x30] sm:$0xff]   ;;  %s2154_s15 = smov (!%p274_p10, %s1314_s15), 63  ;;  %v1640_v2 = vld [vmem:[%s2140_s1 + $0x28] sm:$0xff]  }
  0x14   : > { %1437 = vmatprep.subr.bf16.mxu0 %v1638_v0  ;;  %1581 = vmatprep.subr.bf16.mxu1 %v1638_v0  ;;  %s1315_s20 = sshll.u32 %s2154_s15, 2  ;;  %v1641_v3 = vld [vmem:[%s2140_s1 + $0x20] sm:$0xff]   ;;  %v1642_v5 = vld [vmem:[%s2140_s1 + $0x18] sm:$0xff]   ;;  %v1643_v6 = vld [vmem:[%s2140_s1 + $0x10] sm:$0xff]   ;;  %s270_s15 = sand.u32 1, %s1730_s25  }
  0x15   : > { %1438 = vmatpush3.bf16.msra.mxu0 %v1638_v0  ;;  %1589 = vmatpush3.bf16.msra.mxu1 %v1638_v0  ;;  %s1844_s23 = scalar_lea.vmem %s2139_s0, %s1315_s20  ;;  %v1644_v8 = vld [vmem:[%s2140_s1 + $0x8] sm:$0xff]   ;;  %v1645_v9 = vld [vmem:[%s2140_s1] sm:$0xff]   ;;  %v1662_v12 = vld [vmem:[%s2142_s3 + $0x38] sm:$0xff]   ;;  %s1313_s16 = sshll.u32 %s270_s15, 8 }
  0x16   : > { %1439 = vmatprep.subr.bf16.mxu0 %v1639_v1  ;;  %1582 = vmatprep.subr.bf16.mxu1 %v1639_v1  ;;  %v1646_v4 = vld [vmem:[%s1844_s23] sm:$0xff]   ;;  %v1647_v10 = vld [vmem:[%s1844_s23 + $0x8] sm:$0xff]   ;;  %v1648_v13 = vld [vmem:[%s1844_s23 + $0x10] sm:$0xff]   ;;  %s2023_s19 = scalar_lea.vmem [#allocation2], %s1313_s16  ;;  %s1364_s20 = sshll.u32 %s1804_s28, 12 }
  0x17   : > { %1453 = vmatprep.mubr.bf16.mxu0 %v1646_v4  ;;  %v1654_v7 = vld [vmem:[%s1844_s23 + $0x40] sm:$0xff]   ;;  %v1655_v11 = vld [vmem:[%s1844_s23 + $0x48] sm:$0xff]   ;;  %v1656_v14 = vld [vmem:[%s1844_s23 + $0x50] sm:$0xff]   ;;  %s1247_s21 = sshll.u32 %s2023_s19, 4  ;;  %s2090_s29 = scalar_lea.hbm %s2146_s7, %s1364_s20  ;;  %s2092_s21 = int_to_ptr.vmem [resolvable:$true] %s1247_s21 }
  0x18   : > { %1469 = vmatprep.mubr.bf16.mxu1 %v1654_v7  ;;  %v1663_v15 = vld [vmem:[%s2142_s3 + $0x30] sm:$0xff]   ;;  %v1664_v16 = vld [vmem:[%s2142_s3 + $0x28] sm:$0xff]   ;;  %v1649_v17 = vld [vmem:[%s1844_s23 + $0x18] sm:$0xff]   ;;  %s2099_s28 = scalar_lea.sflag [#allocation3], %s270_s15  ;;  %s1678_s8 = scalar_lea.vmem %s2092_s21, 4096 }
  0x19   : > { %1440 = vmatpush3.bf16.msra.mxu0 %v1639_v1  ;;  %1590 = vmatpush3.bf16.msra.mxu1 %v1639_v1  ;;  %v1657_v18 = vld [vmem:[%s1844_s23 + $0x58] sm:$0xff]   ;;  %v1650_v19 = vld [vmem:[%s1844_s23 + $0x20] sm:$0xff]   ;;  %v1651_v23 = vld [vmem:[%s1844_s23 + $0x28] sm:$0xff]   ;;  %p1679_p11 = scmp.ne.s32.totalorder %s2092_s21, %s1678_s8  ;;  %p1685_p0 = scmp.lt.s32.totalorder %s2092_s21, %s1683_s13 }
  0x1a   : > { %1441 = vmatprep.subr.bf16.mxu0 %v1640_v2  ;;  %1583 = vmatprep.subr.bf16.mxu1 %v1640_v2  ;;  %v1658_v20 = vld [vmem:[%s1844_s23 + $0x60] sm:$0xff]   ;;  %v1666_v22 = vld [vmem:[%s2142_s3 + $0x18] sm:$0xff]   ;;  %v1659_v24 = vld [vmem:[%s1844_s23 + $0x68] sm:$0xff]   ;;  %p1686_p1 = scmp.lt.s32.totalorder %s1684_s14, %s1678_s8 }
  0x1b   : > { %v1665_v21 = vld [vmem:[%s2142_s3 + $0x20] sm:$0xff]   ;;  %v1652_v25 = vld [vmem:[%s1844_s23 + $0x30] sm:$0xff]   ;;  %v1653_v27 = vld [vmem:[%s1844_s23 + $0x38] sm:$0xff]   ;;  %p1680_p12 = pnand %p1679_p11, %p1821_p5 }
  0x1c   : > { %v1660_v26 = vld [vmem:[%s1844_s23 + $0x70] sm:$0xff]   ;;  %v1661_v28 = vld [vmem:[%s1844_s23 + $0x78] sm:$0xff]   ;;  %v1668_v30 = vld [vmem:[%s2142_s3 + $0x8] sm:$0xff]   ;;  %p1687_p2 = por %p1686_p1, %p1685_p0 }
  0x1d   : > { %1442 = vmatpush3.bf16.msra.mxu0 %v1640_v2  ;;  %1591 = vmatpush3.bf16.msra.mxu1 %v1640_v2  ;;  %v1667_v29 = vld [vmem:[%s2142_s3 + $0x10] sm:$0xff]   ;;  %v1669_v31 = vld [vmem:[%s2142_s3] sm:$0xff]   ;;  %v1670_v32 = vld [vmem:[%s2144_s5 + $0x38] sm:$0xff]   ;;  %p1681_p13 = pneg %p1680_p12 }
  0x1e   : > { %1443 = vmatprep.subr.bf16.mxu0 %v1641_v3  ;;  %1584 = vmatprep.subr.bf16.mxu1 %v1641_v3  ;;  %v1671_v33 = vld [vmem:[%s2144_s5 + $0x30] sm:$0xff]   ;;  %v1672_v34 = vld [vmem:[%s2144_s5 + $0x28] sm:$0xff]   ;;  %v1673_v35 = vld [vmem:[%s2144_s5 + $0x20] sm:$0xff]  }
  0x1f   : > { %v1674_v36 = vld [vmem:[%s2144_s5 + $0x18] sm:$0xff]   ;;  %v1921_v41 = vld [vmem:[%s2141_s2] ss:$0 sm:$0xff]  ;;  %p1688_p3 = pnand %p1687_p2, %p1681_p13 }
  0x21   : > { %1444 = vmatpush3.bf16.msra.mxu0 %v1641_v3  ;;  %1592 = vmatpush3.bf16.msra.mxu1 %v1641_v3 }
  0x22   : > { %1445 = vmatprep.subr.bf16.mxu0 %v1642_v5  ;;  %1585 = vmatprep.subr.bf16.mxu1 %v1642_v5 }
  0x25   : > { %1446 = vmatpush3.bf16.msra.mxu0 %v1642_v5  ;;  %1593 = vmatpush3.bf16.msra.mxu1 %v1642_v5 }
  0x26   : > { %1447 = vmatprep.subr.bf16.mxu0 %v1643_v6  ;;  %1586 = vmatprep.subr.bf16.mxu1 %v1643_v6 }
  0x29   : > { %1448 = vmatpush3.bf16.msra.mxu0 %v1643_v6  ;;  %1594 = vmatpush3.bf16.msra.mxu1 %v1643_v6 }
  0x2a   : > { %1449 = vmatprep.subr.bf16.mxu0 %v1644_v8  ;;  %1587 = vmatprep.subr.bf16.mxu1 %v1644_v8 }
  0x2d   : > { %1450 = vmatpush3.bf16.msra.mxu0 %v1644_v8  ;;  %1595 = vmatpush3.bf16.msra.mxu1 %v1644_v8 }
  0x2e   : > { %1451 = vmatprep.subr.bf16.mxu0 %v1645_v9  ;;  %1588 = vmatprep.subr.bf16.mxu1 %v1645_v9 }
  0x31   : > { %1452 = vmatpush3.bf16.msra.mxu0 %v1645_v9  ;;  %1596 = vmatpush3.bf16.msra.mxu1 %v1645_v9 }
  0x32   : > { %1485 = vmatprep.subr.bf16.mxu1 %v1662_v12  ;;  %1533 = vmatprep.subr.bf16.mxu0 %v1670_v32 }
  0x34   : > { %1454 = vmatmul.mubr.bf16.vlgmr.msra.gmra.mxu0 %v1647_v10  ;;  %1470 = vmatmul.mubr.bf16.vlgmr.msra.gmra.mxu1 %v1655_v11 }
  0x35   : > { %1457 = vmatprep.mubr.bf16.mxu0 %v1648_v13  ;;  %1473 = vmatprep.mubr.bf16.mxu1 %v1656_v14 }
  0x36   : > { %1486 = vmatpush3.bf16.msra.mxu1 %v1662_v12  ;;  %1534 = vmatpush3.bf16.msra.mxu0 %v1670_v32 }
  0x37   : > { %1487 = vmatprep.subr.bf16.mxu1 %v1663_v15  ;;  %1535 = vmatprep.subr.bf16.mxu0 %v1671_v33 }
  0x3a   : > { %1488 = vmatpush3.bf16.msra.mxu1 %v1663_v15  ;;  %1536 = vmatpush3.bf16.msra.mxu0 %v1671_v33 }
  0x3b   : > { %1489 = vmatprep.subr.bf16.mxu1 %v1664_v16  ;;  %1537 = vmatprep.subr.bf16.mxu0 %v1672_v34 }
  0x3c   : > { %1458 = vmatmul.mubr.bf16.gmra.mxu0 %v1649_v17  ;;  %1474 = vmatmul.mubr.bf16.gmra.mxu1 %v1657_v18 }
  0x3d   : > { %1461 = vmatprep.mubr.bf16.mxu0 %v1650_v19  ;;  %1477 = vmatprep.mubr.bf16.mxu1 %v1658_v20 }
  0x3e   : > { %1490 = vmatpush3.bf16.msra.mxu1 %v1664_v16  ;;  %1538 = vmatpush3.bf16.msra.mxu0 %v1672_v34 }
  0x3f   : > { %1491 = vmatprep.subr.bf16.mxu1 %v1665_v21  ;;  %1539 = vmatprep.subr.bf16.mxu0 %v1673_v35 }
  0x42   : > { %1492 = vmatpush3.bf16.msra.mxu1 %v1665_v21  ;;  %1540 = vmatpush3.bf16.msra.mxu0 %v1673_v35 }
  0x43   : > { %1493 = vmatprep.subr.bf16.mxu1 %v1666_v22  ;;  %1541 = vmatprep.subr.bf16.mxu0 %v1674_v36 }
  0x44   : > { %1462 = vmatmul.mubr.bf16.gmra.mxu0 %v1651_v23  ;;  %1478 = vmatmul.mubr.bf16.gmra.mxu1 %v1659_v24 }
  0x45   : > { %1465 = vmatprep.mubr.bf16.mxu0 %v1652_v25  ;;  %1481 = vmatprep.mubr.bf16.mxu1 %v1660_v26 }
  0x46   : > { %1494 = vmatpush3.bf16.msra.mxu1 %v1666_v22  ;;  %1542 = vmatpush3.bf16.msra.mxu0 %v1674_v36 }
  0x47   : > { %1495 = vmatprep.subr.bf16.mxu1 %v1667_v29 }
  0x4a   : > { %1496 = vmatpush3.bf16.msra.mxu1 %v1667_v29 }
  0x4b   : > { %1497 = vmatprep.subr.bf16.mxu1 %v1668_v30 }
  0x4c   : > { %1466 = vmatmul.mubr.bf16.gmra.mxu0 %v1653_v27  ;;  %1482 = vmatmul.mubr.bf16.gmra.mxu1 %v1661_v28 }
  0x4e   : > { %1498 = vmatpush3.bf16.msra.mxu1 %v1668_v30 }
  0x4f   : > { %1499 = vmatprep.subr.bf16.mxu1 %v1669_v31 }
  0x52   : > { %1500 = vmatpush3.bf16.msra.mxu1 %v1669_v31 }
  0xf4   : > { %v1455_v37 = vpop.f32.mrf.mxu0  ;;  %v1916_v38 = vpop.f32.mrf.mxu1 }
  0xf5   : > { %v523_v46 = vadd.f32 %v1455_v37, %v1921_v41 }
  0xf6   : > { %v514_v39 = vpop.f32.mrf.mxu0  ;;  %v578_v40 = vpop.f32.mrf.mxu1 }
  0xf7   : > { %v515_v44 = vadd.f32 %v1921_v41, %v514_v39  ;;  %v643_v55 = vmax.f32 %v523_v46, 0.0  ;;  %v579_v27 = vadd.f32 %v1921_v41, %v578_v40 }
  0xf8   : > { %v1456_v42 = vpop.f32.mrf.mxu0  ;;  %v1923_v43 = vpop.f32.mrf.mxu1 }
  0xf9   : > { %v526_v45 = vadd.f32 %v1456_v42, %v1921_v41  ;;  %v641_v53 = vmax.f32 %v515_v44, 0.0  ;;  %v657_v36 = vmax.f32 %v579_v27, 0.0  ;;  %v1980_v27 = vld [vmem:[%s2143_s4] ss:$0 sm:$0xff] }
  0xfa   : > { %v517_v47 = vpop.f32.mrf.mxu0  ;;  %v581_v48 = vpop.f32.mrf.mxu1 }
  0xfb   : > { %v518_v49 = vadd.f32 %v1921_v41, %v517_v47  ;;  %v644_v50 = vmax.f32 %v526_v45, 0.0  ;;  %v582_v28 = vadd.f32 %v1921_v41, %v581_v48 }
  0xfc   : > { %v1459_v51 = vpop.f32.mrf.mxu0  ;;  %v1929_v52 = vpop.f32.mrf.mxu1 }
  0xfd   : > { %v642_v54 = vmax.f32 %v518_v49, 0.0  ;;  %v674_v59 = vpack.c.bf16 %v644_v50, %v643_v55  ;;  %v539_v0 = vadd.f32 %v1459_v51, %v1921_v41  ;;  %v658_v39 = vmax.f32 %v582_v28, 0.0 }
  0xfe   : > { %v530_v56 = vpop.f32.mrf.mxu0  ;;  %v594_v57 = vpop.f32.mrf.mxu1  ;;  %v587_v51 = vadd.f32 %v1916_v38, %v1921_v41  ;;  %v603_v38 = vadd.f32 %v1929_v52, %v1921_v41 }
  0xff   : > { %v673_v58 = vpack.c.bf16 %v642_v54, %v641_v53  ;;  %v531_v62 = vadd.f32 %v1921_v41, %v530_v56  ;;  %v647_v8 = vmax.f32 %v539_v0, 0.0  ;;  %v681_v48 = vpack.c.bf16 %v658_v39, %v657_v36 }
 0x100   : > { %v1460_v60 = vpop.f32.mrf.mxu0  ;;  %v1931_v61 = vpop.f32.mrf.mxu1  ;;  %v595_v49 = vadd.f32 %v1921_v41, %v594_v57  ;;  %v590_v54 = vadd.f32 %v1923_v43, %v1921_v41 }
 0x101   : > { %v542_v63 = vadd.f32 %v1460_v60, %v1921_v41  ;;  %1501 = vmatprep.mubr.bf16.mxu1 %v673_v58  ;;  %v645_v6 = vmax.f32 %v531_v62, 0.0  ;;  %v606_v43 = vadd.f32 %v1931_v61, %v1921_v41 }
 0x102   : > { %v533_v1 = vpop.f32.mrf.mxu0  ;;  %1502 = vmatmul.mubr.bf16.vlgmr.msra.gmra.mxu1 %v674_v59  ;;  %v597_v5 = vpop.f32.mrf.mxu1  ;;  %v661_v56 = vmax.f32 %v595_v49, 0.0  ;;  %v659_v59 = vmax.f32 %v587_v51, 0.0  ;;  %v660_v60 = vmax.f32 %v590_v54, 0.0 }
 0x103   : > { %v534_v2 = vadd.f32 %v1921_v41, %v533_v1  ;;  %v648_v3 = vmax.f32 %v542_v63, 0.0  ;;  %v598_v50 = vadd.f32 %v1921_v41, %v597_v5  ;;  %v663_v5 = vmax.f32 %v603_v38, 0.0 }
 0x104   : > { %v1463_v4 = vpop.f32.mrf.mxu0  ;;  %v1937_v13 = vpop.f32.mrf.mxu1  ;;  %v682_v1 = vpack.c.bf16 %v660_v60, %v659_v59 }
 0x105   : > { %v646_v7 = vmax.f32 %v534_v2, 0.0  ;;  %v676_v11 = vpack.c.bf16 %v648_v3, %v647_v8  ;;  %v555_v16 = vadd.f32 %v1463_v4, %v1921_v41  ;;  %v662_v58 = vmax.f32 %v598_v50, 0.0 }
 0x106   : > { %v546_v9 = vpop.f32.mrf.mxu0  ;;  %v610_v21 = vpop.f32.mrf.mxu1  ;;  %v619_v52 = vadd.f32 %v1937_v13, %v1921_v41  ;;  %v1675_v13 = vld [vmem:[%s2144_s5 + $0x10] sm:$0xff]  }
 0x107   : > { %v675_v10 = vpack.c.bf16 %v646_v7, %v645_v6  ;;  %v547_v14 = vadd.f32 %v1921_v41, %v546_v9  ;;  %v651_v24 = vmax.f32 %v555_v16, 0.0  ;;  %v683_v63 = vpack.c.bf16 %v662_v58, %v661_v56  ;;  %1543 = vmatprep.subr.bf16.mxu0 %v1675_v13 }
 0x108   : > { %v1464_v12 = vpop.f32.mrf.mxu0  ;;  %v1480_v31 = vpop.f32.mrf.mxu1  ;;  %v611_v57 = vadd.f32 %v1921_v41, %v610_v21  ;;  %v664_v6 = vmax.f32 %v606_v43, 0.0  ;;  %1544 = vmatpush3.bf16.msra.mxu0 %v1675_v13 }
 0x109   : > { %v558_v15 = vadd.f32 %v1464_v12, %v1921_v41  ;;  %1505 = vmatprep.mubr.bf16.mxu1 %v675_v10  ;;  %v649_v22 = vmax.f32 %v547_v14, 0.0  ;;  %v622_v12 = vadd.f32 %v1480_v31, %v1921_v41 }
 0x10a   : > { %v549_v17 = vpop.f32.mrf.mxu0  ;;  %1506 = vmatmul.mubr.bf16.gmra.mxu1 %v676_v11  ;;  %v613_v40 = vpop.f32.mrf.mxu1  ;;  %v665_v3 = vmax.f32 %v611_v57, 0.0  ;;  %v684_v11 = vpack.c.bf16 %v664_v6, %v663_v5 }
 0x10b   : > { %v550_v18 = vadd.f32 %v1921_v41, %v549_v17  ;;  %v652_v19 = vmax.f32 %v558_v15, 0.0  ;;  %v614_v0 = vadd.f32 %v1921_v41, %v613_v40  ;;  %v667_v15 = vmax.f32 %v619_v52, 0.0 }
 0x10c   : > { %v1467_v20 = vpop.f32.mrf.mxu0  ;;  %v1483_v55 = vpop.f32.mrf.mxu1  ;;  %v668_v16 = vmax.f32 %v622_v12, 0.0 }
 0x10d   : > { %v650_v23 = vmax.f32 %v550_v18, 0.0  ;;  %v678_v29 = vpack.c.bf16 %v652_v19, %v651_v24  ;;  %v571_v34 = vadd.f32 %v1467_v20, %v1921_v41  ;;  %v666_v4 = vmax.f32 %v614_v0, 0.0  ;;  %v1676_v24 = vld [vmem:[%s2144_s5 + $0x8] sm:$0xff]  }
 0x10e   : > { %v562_v25 = vpop.f32.mrf.mxu0  ;;  %v626_v62 = vpop.f32.mrf.mxu1  ;;  %v686_v18 = vpack.c.bf16 %v668_v16, %v667_v15  ;;  %v635_v19 = vadd.f32 %v1483_v55, %v1921_v41  ;;  %1545 = vmatprep.subr.bf16.mxu0 %v1676_v24 }
 0x10f   : > { %v677_v26 = vpack.c.bf16 %v650_v23, %v649_v22  ;;  %v563_v32 = vadd.f32 %v1921_v41, %v562_v25  ;;  %v655_v46 = vmax.f32 %v571_v34, 0.0  ;;  %v685_v8 = vpack.c.bf16 %v666_v4, %v665_v3  ;;  %1546 = vmatpush3.bf16.msra.mxu0 %v1676_v24 }
 0x110   : > { %v1468_v30 = vpop.f32.mrf.mxu0  ;;  %v1484_v2 = vpop.f32.mrf.mxu1  ;;  %v627_v9 = vadd.f32 %v1921_v41, %v626_v62  ;;  %v671_v21 = vmax.f32 %v635_v19, 0.0 }
 0x111   : > { %v574_v33 = vadd.f32 %v1468_v30, %v1921_v41  ;;  %1509 = vmatprep.mubr.bf16.mxu1 %v677_v26  ;;  %v653_v44 = vmax.f32 %v563_v32, 0.0  ;;  %v638_v20 = vadd.f32 %v1484_v2, %v1921_v41 }
 0x112   : > { %v565_v35 = vpop.f32.mrf.mxu0  ;;  %1510 = vmatmul.mubr.bf16.gmra.mxu1 %v678_v29  ;;  %v629_v7 = vpop.f32.mrf.mxu1  ;;  %v669_v61 = vmax.f32 %v627_v9, 0.0 }
 0x113   : > { %v566_v37 = vadd.f32 %v1921_v41, %v565_v35  ;;  %v656_v42 = vmax.f32 %v574_v33, 0.0  ;;  %v630_v10 = vadd.f32 %v1921_v41, %v629_v7  ;;  %v672_v22 = vmax.f32 %v638_v20, 0.0  ;;  %v1677_v41 = vld [vmem:[%s2144_s5] sm:$0xff]  }
 0x114   : > { %1547 = vmatprep.subr.bf16.mxu0 %v1677_v41 }
 0x115   : > { %v654_v45 = vmax.f32 %v566_v37, 0.0  ;;  %v680_v53 = vpack.c.bf16 %v656_v42, %v655_v46  ;;  %v670_v14 = vmax.f32 %v630_v10, 0.0  ;;  %v688_v23 = vpack.c.bf16 %v672_v22, %v671_v21  ;;  %1548 = vmatpush3.bf16.msra.mxu0 %v1677_v41 }
 0x117   : > { %v679_v47 = vpack.c.bf16 %v654_v45, %v653_v44  ;;  %v687_v17 = vpack.c.bf16 %v670_v14, %v669_v61 }
 0x119   : > { %1513 = vmatprep.mubr.bf16.mxu1 %v679_v47 }
 0x11a   : > { %1514 = vmatmul.mubr.bf16.gmra.mxu1 %v680_v53 }
 0x11b   : > { %1517 = vmatprep.mubr.bf16.mxu1 %v681_v48 }
 0x122   : > { %1518 = vmatmul.mubr.bf16.gmra.mxu1 %v682_v1 }
 0x123   : > { %1521 = vmatprep.mubr.bf16.mxu1 %v683_v63 }
 0x12a   : > { %1522 = vmatmul.mubr.bf16.gmra.mxu1 %v684_v11 }
 0x12b   : > { %1525 = vmatprep.mubr.bf16.mxu1 %v685_v8 }
 0x132   : > { %1526 = vmatmul.mubr.bf16.gmra.mxu1 %v686_v18 }
 0x133   : > { %1529 = vmatprep.mubr.bf16.mxu1 %v687_v17 }
 0x13a   : > { %1530 = vmatmul.mubr.bf16.gmra.mxu1 %v688_v23 }
 0x1c2   : > { %v1503_v25 = vpop.f32.mrf.mxu1 }
 0x1c3   : > { %v803_v31 = vadd.f32 %v1503_v25, %v1980_v27 }
 0x1c4   : > { %v794_v26 = vpop.f32.mrf.mxu1 }
 0x1c5   : > { %v795_v29 = vadd.f32 %v1980_v27, %v794_v26  ;;  %v923_v39 = vmax.f32 %v803_v31, 0.0 }
 0x1c6   : > { %v1504_v28 = vpop.f32.mrf.mxu1 }
 0x1c7   : > { %v806_v30 = vadd.f32 %v1504_v28, %v1980_v27  ;;  %v921_v36 = vmax.f32 %v795_v29, 0.0 }
 0x1c8   : > { %v797_v32 = vpop.f32.mrf.mxu1 }
 0x1c9   : > { %v798_v33 = vadd.f32 %v1980_v27, %v797_v32  ;;  %v924_v34 = vmax.f32 %v806_v30, 0.0 }
 0x1ca   : > { %v1507_v35 = vpop.f32.mrf.mxu1 }
 0x1cb   : > { %v922_v37 = vmax.f32 %v798_v33, 0.0  ;;  %v954_v44 = vpack.c.bf16 %v924_v34, %v923_v39  ;;  %v819_v48 = vadd.f32 %v1507_v35, %v1980_v27 }
 0x1cc   : > { %v810_v42 = vpop.f32.mrf.mxu1 }
 0x1cd   : > { %v953_v40 = vpack.c.bf16 %v922_v37, %v921_v36  ;;  %v811_v46 = vadd.f32 %v1980_v27, %v810_v42  ;;  %v927_v56 = vmax.f32 %v819_v48, 0.0 }
 0x1ce   : > { %v1508_v45 = vpop.f32.mrf.mxu1 }
 0x1cf   : > { %v822_v47 = vadd.f32 %v1508_v45, %v1980_v27  ;;  %1549 = vmatprep.mubr.bf16.mxu0 %v953_v40  ;;  %v925_v54 = vmax.f32 %v811_v46, 0.0 }
 0x1d0   : > { %v813_v49 = vpop.f32.mrf.mxu1  ;;  %1550 = vmatmul.mubr.bf16.vlgmr.msra.gmra.mxu0 %v954_v44 }
 0x1d1   : > { %v814_v50 = vadd.f32 %v1980_v27, %v813_v49  ;;  %v928_v51 = vmax.f32 %v822_v47, 0.0 }
 0x1d2   : > { %v1511_v53 = vpop.f32.mrf.mxu1 }
 0x1d3   : > { %v926_v55 = vmax.f32 %v814_v50, 0.0  ;;  %v956_v60 = vpack.c.bf16 %v928_v51, %v927_v56  ;;  %v835_v0 = vadd.f32 %v1511_v53, %v1980_v27 }
 0x1d4   : > { %v826_v58 = vpop.f32.mrf.mxu1 }
 0x1d5   : > { %v955_v59 = vpack.c.bf16 %v926_v55, %v925_v54  ;;  %v827_v63 = vadd.f32 %v1980_v27, %v826_v58  ;;  %v931_v5 = vmax.f32 %v835_v0, 0.0 }
 0x1d6   : > { %v1512_v62 = vpop.f32.mrf.mxu1 }
 0x1d7   : > { %v838_v57 = vadd.f32 %v1512_v62, %v1980_v27  ;;  %1553 = vmatprep.mubr.bf16.mxu0 %v955_v59  ;;  %v929_v3 = vmax.f32 %v827_v63, 0.0 }
 0x1d8   : > { %v829_v1 = vpop.f32.mrf.mxu1  ;;  %1554 = vmatmul.mubr.bf16.gmra.mxu0 %v956_v60 }
 0x1d9   : > { %v830_v38 = vadd.f32 %v1980_v27, %v829_v1  ;;  %v932_v43 = vmax.f32 %v838_v57, 0.0 }
 0x1da   : > { %v1515_v2 = vpop.f32.mrf.mxu1 }
 0x1db   : > { %v930_v4 = vmax.f32 %v830_v38, 0.0  ;;  %v958_v8 = vpack.c.bf16 %v932_v43, %v931_v5  ;;  %v851_v52 = vadd.f32 %v1515_v2, %v1980_v27 }
 0x1dc   : > { %v842_v6 = vpop.f32.mrf.mxu1 }
 0x1dd   : > { %v957_v7 = vpack.c.bf16 %v930_v4, %v929_v3  ;;  %v843_v10 = vadd.f32 %v1980_v27, %v842_v6  ;;  %v935_v18 = vmax.f32 %v851_v52, 0.0 }
 0x1de   : > { %v1516_v9 = vpop.f32.mrf.mxu1 }
 0x1df   : > { %v854_v11 = vadd.f32 %v1516_v9, %v1980_v27  ;;  %1557 = vmatprep.mubr.bf16.mxu0 %v957_v7  ;;  %v933_v16 = vmax.f32 %v843_v10, 0.0 }
 0x1e0   : > { %v845_v12 = vpop.f32.mrf.mxu1  ;;  %1558 = vmatmul.mubr.bf16.gmra.mxu0 %v958_v8 }
 0x1e1   : > { %v846_v61 = vadd.f32 %v1980_v27, %v845_v12  ;;  %v936_v14 = vmax.f32 %v854_v11, 0.0 }
 0x1e2   : > { %v1519_v15 = vpop.f32.mrf.mxu1 }
 0x1e3   : > { %v934_v17 = vmax.f32 %v846_v61, 0.0  ;;  %v960_v21 = vpack.c.bf16 %v936_v14, %v935_v18  ;;  %v867_v24 = vadd.f32 %v1519_v15, %v1980_v27  ;;  %v2020_v61 = vld [vmem:[%s2145_s6] ss:$0 sm:$0xff] }
 0x1e4   : > { %v858_v19 = vpop.f32.mrf.mxu1 }
 0x1e5   : > { %v959_v20 = vpack.c.bf16 %v934_v17, %v933_v16  ;;  %v859_v23 = vadd.f32 %v1980_v27, %v858_v19  ;;  %v939_v31 = vmax.f32 %v867_v24, 0.0 }
 0x1e6   : > { %v1520_v22 = vpop.f32.mrf.mxu1 }
 0x1e7   : > { %v870_v13 = vadd.f32 %v1520_v22, %v1980_v27  ;;  %1561 = vmatprep.mubr.bf16.mxu0 %v959_v20  ;;  %v937_v29 = vmax.f32 %v859_v23, 0.0 }
 0x1e8   : > { %v861_v41 = vpop.f32.mrf.mxu1  ;;  %1562 = vmatmul.mubr.bf16.gmra.mxu0 %v960_v21 }
 0x1e9   : > { %v862_v25 = vadd.f32 %v1980_v27, %v861_v41  ;;  %v940_v26 = vmax.f32 %v870_v13, 0.0 }
 0x1ea   : > { %v1523_v28 = vpop.f32.mrf.mxu1 }
 0x1eb   : > { %v938_v30 = vmax.f32 %v862_v25, 0.0  ;;  %v962_v34 = vpack.c.bf16 %v940_v26, %v939_v31  ;;  %v883_v39 = vadd.f32 %v1523_v28, %v1980_v27 }
 0x1ec   : > { %v874_v32 = vpop.f32.mrf.mxu1 }
 0x1ed   : > { %v961_v33 = vpack.c.bf16 %v938_v30, %v937_v29  ;;  %v875_v36 = vadd.f32 %v1980_v27, %v874_v32  ;;  %v943_v48 = vmax.f32 %v883_v39, 0.0 }
 0x1ee   : > { %v1524_v35 = vpop.f32.mrf.mxu1 }
 0x1ef   : > { %v886_v37 = vadd.f32 %v1524_v35, %v1980_v27  ;;  %1565 = vmatprep.mubr.bf16.mxu0 %v961_v33  ;;  %v941_v46 = vmax.f32 %v875_v36, 0.0 }
 0x1f0   : > { %v877_v42 = vpop.f32.mrf.mxu1  ;;  %1566 = vmatmul.mubr.bf16.gmra.mxu0 %v962_v34 }
 0x1f1   : > { %v878_v40 = vadd.f32 %v1980_v27, %v877_v42  ;;  %v944_v44 = vmax.f32 %v886_v37, 0.0 }
 0x1f2   : > { %v1527_v45 = vpop.f32.mrf.mxu1 }
 0x1f3   : > { %v942_v47 = vmax.f32 %v878_v40, 0.0  ;;  %v964_v51 = vpack.c.bf16 %v944_v44, %v943_v48  ;;  %v899_v56 = vadd.f32 %v1527_v45, %v1980_v27 }
 0x1f4   : > { %v890_v49 = vpop.f32.mrf.mxu1 }
 0x1f5   : > { %v963_v50 = vpack.c.bf16 %v942_v47, %v941_v46  ;;  %v891_v54 = vadd.f32 %v1980_v27, %v890_v49  ;;  %v947_v0 = vmax.f32 %v899_v56, 0.0 }
 0x1f6   : > { %v1528_v53 = vpop.f32.mrf.mxu1 }
 0x1f7   : > { %v902_v55 = vadd.f32 %v1528_v53, %v1980_v27  ;;  %1569 = vmatprep.mubr.bf16.mxu0 %v963_v50  ;;  %v945_v63 = vmax.f32 %v891_v54, 0.0 }
 0x1f8   : > { %v893_v58 = vpop.f32.mrf.mxu1  ;;  %1570 = vmatmul.mubr.bf16.gmra.mxu0 %v964_v51 }
 0x1f9   : > { %v894_v59 = vadd.f32 %v1980_v27, %v893_v58  ;;  %v948_v60 = vmax.f32 %v902_v55, 0.0 }
 0x1fa   : > { %v1531_v62 = vpop.f32.mrf.mxu1 }
 0x1fb   : > { %v946_v57 = vmax.f32 %v894_v59, 0.0  ;;  %v966_v43 = vpack.c.bf16 %v948_v60, %v947_v0  ;;  %v915_v5 = vadd.f32 %v1531_v62, %v1980_v27 }
 0x1fc   : > { %v906_v1 = vpop.f32.mrf.mxu1 }
 0x1fd   : > { %v965_v38 = vpack.c.bf16 %v946_v57, %v945_v63  ;;  %v907_v3 = vadd.f32 %v1980_v27, %v906_v1  ;;  %v951_v11 = vmax.f32 %v915_v5, 0.0 }
 0x1fe   : > { %v1532_v2 = vpop.f32.mrf.mxu1 }
 0x1ff   : > { %v918_v4 = vadd.f32 %v1532_v2, %v1980_v27  ;;  %1573 = vmatprep.mubr.bf16.mxu0 %v965_v38  ;;  %v949_v9 = vmax.f32 %v907_v3, 0.0 }
 0x200   : > { %v909_v6 = vpop.f32.mrf.mxu1  ;;  %1574 = vmatmul.mubr.bf16.gmra.mxu0 %v966_v43 }
 0x201   : > { %v910_v7 = vadd.f32 %v1980_v27, %v909_v6  ;;  %v952_v8 = vmax.f32 %v918_v4, 0.0 }
 0x203   : > { %v950_v10 = vmax.f32 %v910_v7, 0.0  ;;  %v968_v12 = vpack.c.bf16 %v952_v8, %v951_v11 }
 0x205   : > { %v967_v52 = vpack.c.bf16 %v950_v10, %v949_v9 }
 0x207   : > { %1577 = vmatprep.mubr.bf16.mxu0 %v967_v52 }
 0x208   : > { %1578 = vmatmul.mubr.bf16.gmra.mxu0 %v968_v12 }
 0x290   : > { %v1551_v14 = vpop.f32.mrf.mxu0 }
 0x291   : > { %v1083_v15 = vadd.f32 %v1551_v14, %v2020_v61 }
 0x292   : > { %v1074_v27 = vpop.f32.mrf.mxu0 }
 0x293   : > { %1203 = vst [vmem:[%s2023_s19 + $0x10] sm:$0xff] %v1083_v15  ;;  %v1075_v16 = vadd.f32 %v2020_v61, %v1074_v27 }
 0x294   : > { %v1552_v17 = vpop.f32.mrf.mxu0 }
 0x295   : > { %1201 = vst [vmem:[%s2023_s19] sm:$0xff] %v1075_v16  ;;  %v1086_v18 = vadd.f32 %v1552_v17, %v2020_v61 }
 0x296   : > { %v1077_v19 = vpop.f32.mrf.mxu0 }
 0x297   : > { %1204 = vst [vmem:[%s2023_s19 + $0x18] sm:$0xff] %v1086_v18  ;;  %v1078_v20 = vadd.f32 %v2020_v61, %v1077_v19 }
 0x298   : > { %v1555_v21 = vpop.f32.mrf.mxu0 }
 0x299   : > { %1202 = vst [vmem:[%s2023_s19 + $0x8] sm:$0xff] %v1078_v20  ;;  %v1099_v22 = vadd.f32 %v1555_v21, %v2020_v61 }
 0x29a   : > { %v1090_v23 = vpop.f32.mrf.mxu0 }
 0x29b   : > { %1207 = vst [vmem:[%s2023_s19 + $0x30] sm:$0xff] %v1099_v22  ;;  %v1091_v13 = vadd.f32 %v2020_v61, %v1090_v23 }
 0x29c   : > { %v1556_v24 = vpop.f32.mrf.mxu0 }
 0x29d   : > { %1205 = vst [vmem:[%s2023_s19 + $0x20] sm:$0xff] %v1091_v13  ;;  %v1102_v41 = vadd.f32 %v1556_v24, %v2020_v61 }
 0x29e   : > { %v1093_v25 = vpop.f32.mrf.mxu0 }
 0x29f   : > { %1208 = vst [vmem:[%s2023_s19 + $0x38] sm:$0xff] %v1102_v41  ;;  %v1094_v26 = vadd.f32 %v2020_v61, %v1093_v25 }
 0x2a0   : > { %v1559_v28 = vpop.f32.mrf.mxu0 }
 0x2a1   : > { %1206 = vst [vmem:[%s2023_s19 + $0x28] sm:$0xff] %v1094_v26  ;;  %v1115_v29 = vadd.f32 %v1559_v28, %v2020_v61 }
 0x2a2   : > { %v1106_v30 = vpop.f32.mrf.mxu0 }
 0x2a3   : > { %1211 = vst [vmem:[%s2023_s19 + $0x50] sm:$0xff] %v1115_v29  ;;  %v1107_v31 = vadd.f32 %v2020_v61, %v1106_v30 }
 0x2a4   : > { %v1560_v32 = vpop.f32.mrf.mxu0 }
 0x2a5   : > { %1209 = vst [vmem:[%s2023_s19 + $0x40] sm:$0xff] %v1107_v31  ;;  %v1118_v33 = vadd.f32 %v1560_v32, %v2020_v61 }
 0x2a6   : > { %v1109_v34 = vpop.f32.mrf.mxu0 }
 0x2a7   : > { %1212 = vst [vmem:[%s2023_s19 + $0x58] sm:$0xff] %v1118_v33  ;;  %v1110_v35 = vadd.f32 %v2020_v61, %v1109_v34 }
 0x2a8   : > { %v1563_v36 = vpop.f32.mrf.mxu0 }
 0x2a9   : > { %1210 = vst [vmem:[%s2023_s19 + $0x48] sm:$0xff] %v1110_v35  ;;  %v1131_v37 = vadd.f32 %v1563_v36, %v2020_v61 }
 0x2aa   : > { %v1122_v39 = vpop.f32.mrf.mxu0 }
 0x2ab   : > { %1215 = vst [vmem:[%s2023_s19 + $0x70] sm:$0xff] %v1131_v37  ;;  %v1123_v42 = vadd.f32 %v2020_v61, %v1122_v39 }
 0x2ac   : > { %v1564_v40 = vpop.f32.mrf.mxu0 }
 0x2ad   : > { %1213 = vst [vmem:[%s2023_s19 + $0x60] sm:$0xff] %v1123_v42  ;;  %v1134_v44 = vadd.f32 %v1564_v40, %v2020_v61 }
 0x2ae   : > { %v1125_v45 = vpop.f32.mrf.mxu0 }
 0x2af   : > { %1216 = vst [vmem:[%s2023_s19 + $0x78] sm:$0xff] %v1134_v44  ;;  %v1126_v46 = vadd.f32 %v2020_v61, %v1125_v45 }
 0x2b0   : > { %v1567_v47 = vpop.f32.mrf.mxu0 }
 0x2b1   : > { %1214 = vst [vmem:[%s2023_s19 + $0x68] sm:$0xff] %v1126_v46  ;;  %v1147_v48 = vadd.f32 %v1567_v47, %v2020_v61 }
 0x2b2   : > { %v1138_v49 = vpop.f32.mrf.mxu0 }
 0x2b3   : > { %1219 = vst [vmem:[%s2023_s19 + $0x90] sm:$0xff] %v1147_v48  ;;  %v1139_v50 = vadd.f32 %v2020_v61, %v1138_v49 }
 0x2b4   : > { %v1568_v51 = vpop.f32.mrf.mxu0 }
 0x2b5   : > { %1217 = vst [vmem:[%s2023_s19 + $0x80] sm:$0xff] %v1139_v50  ;;  %v1150_v53 = vadd.f32 %v1568_v51, %v2020_v61 }
 0x2b6   : > { %v1141_v54 = vpop.f32.mrf.mxu0 }
 0x2b7   : > { %1220 = vst [vmem:[%s2023_s19 + $0x98] sm:$0xff] %v1150_v53  ;;  %v1142_v55 = vadd.f32 %v2020_v61, %v1141_v54 }
 0x2b8   : > { %v1571_v56 = vpop.f32.mrf.mxu0 }
 0x2b9   : > { %1218 = vst [vmem:[%s2023_s19 + $0x88] sm:$0xff] %v1142_v55  ;;  %v1163_v58 = vadd.f32 %v1571_v56, %v2020_v61 }
 0x2ba   : > { %v1154_v59 = vpop.f32.mrf.mxu0 }
 0x2bb   : > { %1223 = vst [vmem:[%s2023_s19 + $0xb0] sm:$0xff] %v1163_v58  ;;  %v1155_v60 = vadd.f32 %v2020_v61, %v1154_v59 }
 0x2bc   : > { %v1572_v62 = vpop.f32.mrf.mxu0 }
 0x2bd   : > { %1221 = vst [vmem:[%s2023_s19 + $0xa0] sm:$0xff] %v1155_v60  ;;  %v1166_v63 = vadd.f32 %v1572_v62, %v2020_v61 }
 0x2be   : > { %v1157_v57 = vpop.f32.mrf.mxu0 }
 0x2bf   : > { %1224 = vst [vmem:[%s2023_s19 + $0xb8] sm:$0xff] %v1166_v63  ;;  %v1158_v0 = vadd.f32 %v2020_v61, %v1157_v57 }
 0x2c0   : > { %v1575_v1 = vpop.f32.mrf.mxu0 }
 0x2c1   : > { %1222 = vst [vmem:[%s2023_s19 + $0xa8] sm:$0xff] %v1158_v0  ;;  %v1179_v38 = vadd.f32 %v1575_v1, %v2020_v61 }
 0x2c2   : > { %v1170_v43 = vpop.f32.mrf.mxu0 }
 0x2c3   : > { %1227 = vst [vmem:[%s2023_s19 + $0xd0] sm:$0xff] %v1179_v38  ;;  %v1171_v2 = vadd.f32 %v2020_v61, %v1170_v43 }
 0x2c4   : > { %v1576_v3 = vpop.f32.mrf.mxu0 }
 0x2c5   : > { %1225 = vst [vmem:[%s2023_s19 + $0xc0] sm:$0xff] %v1171_v2  ;;  %v1182_v4 = vadd.f32 %v1576_v3, %v2020_v61 }
 0x2c6   : > { %v1173_v5 = vpop.f32.mrf.mxu0 }
 0x2c7   : > { %1228 = vst [vmem:[%s2023_s19 + $0xd8] sm:$0xff] %v1182_v4  ;;  %v1174_v6 = vadd.f32 %v2020_v61, %v1173_v5 }
 0x2c8   : > { %v1579_v7 = vpop.f32.mrf.mxu0 }
 0x2c9   : > { %1226 = vst [vmem:[%s2023_s19 + $0xc8] sm:$0xff] %v1174_v6  ;;  %v1195_v8 = vadd.f32 %v1579_v7, %v2020_v61 }
 0x2ca   : > { %v1186_v9 = vpop.f32.mrf.mxu0 }
 0x2cb   : > { %1231 = vst [vmem:[%s2023_s19 + $0xf0] sm:$0xff] %v1195_v8  ;;  %v1187_v10 = vadd.f32 %v2020_v61, %v1186_v9 }
 0x2cc   : > { %v1580_v11 = vpop.f32.mrf.mxu0 }
 0x2cd   : > { %1229 = vst [vmem:[%s2023_s19 + $0xe0] sm:$0xff] %v1187_v10  ;;  %v1198_v52 = vadd.f32 %v1580_v11, %v2020_v61 }
 0x2ce   : > { %v1189_v12 = vpop.f32.mrf.mxu0 }
 0x2cf   : > { %1232 = vst [vmem:[%s2023_s19 + $0xf8] sm:$0xff] %v1198_v52  ;;  %v1190_v14 = vadd.f32 %v2020_v61, %v1189_v12 }
 0x2d1   : > { %1230 = vst [vmem:[%s2023_s19 + $0xe8] sm:$0xff] %v1190_v14 }
 0x2d2   : > { %1691 = shalt.err (!%p1688_p3)
}
 0x2d3   : > { %s1692_s15 = scalar_lea.hbm %s2090_s29, 4096  ;;  %s1696_s18 = scalar_lea.hbm %s2146_s7, 8192 }
 0x2d4   : > { %p1693_p4 = scmp.ne.s32.totalorder %s2090_s29, %s1692_s15  ;;  %p1697_p9 = scmp.lt.s32.totalorder %s2090_s29, %s2146_s7 }
 0x2d5   : > { %p1698_p10 = scmp.lt.s32.totalorder %s1696_s18, %s1692_s15 }
 0x2d6   : > { %p1694_p7 = pnand %p1693_p4, %p1821_p5 }
 0x2d7   : > { %p1699_p11 = por %p1698_p10, %p1697_p9 }
 0x2d8   : > { %p1695_p8 = pneg %p1694_p7 }
 0x2da   : > { %p1700_p12 = pnand %p1699_p11, %p1695_p8 }
 0x2dc   : > { %1703 = shalt.err (!%p1700_p12)
}
 0x2dd   : > { %s1741_s22 = smov 128   ;;  %s1742_s23 = smov 8  }
 0x2de   : > { %1597 = dma.vmem_to_hbm [thread:$0]  (%p1821_p5), %s2092_s21, 4096, %s2090_s29, %s2099_s28, %s1741_s22, %s1741_s22, %s1742_s23  }
 0x2df PF: > { %p1603_p13 = scmp.ge.s32.totalorder %s1738_s27, 2  ;;  %s1262_s8 = sand.u32 1, %s1726_s24  }
 0x2e0   : > { %s1263_s9 = scalar_lea.sflag [#allocation3], %s1262_s8 }
 0x2e1   : > { %p1600_p0 = pnand %p1603_p13, %p1825_p6 }
 0x2e3   : > { %p1601_p1 = pneg %p1600_p0 }
 0x2e5   : > { %1721 = dma.done.wait (%p1601_p1), %s1263_s9, 4096  }
 0x2e6   : > { %1723 = vsyncadd (%p1601_p1), %s1263_s9, 4294963200  ;;  %p17_p2 = scmp.ge.s32.totalorder %s1808_s30, 4   ;;  %s2149_s24 = smov %s1730_s25 }
 0x2e7   : > { %s2150_s25 = smov %s1734_s26  ;;  %s2151_s26 = smov %s1819_s10 }
 0x2e8   : > { %s2152_s27 = smov %s1808_s30  ;;  %19 = sbr.rel (!%p17_p2) target bundleno = 3 (0x3), region = 83 }
 0x2ed   :  { %1268 = vsyncpa [#allocation3], 1 }
 0x2ee   :  { %1270 = vsyncpa [#allocation3 + $0x1], 1 }

</bundles_post_ra>
